<compile_context>
chip_gen: v5e
topology: v5e:2x2
jax: 0.10.0
libtpu: 0.0.40
codegen_flags: <defaults>
</compile_context>

<pallas_src>
import jax
import jax.numpy as jnp
from jax.experimental import pallas as pl
from jax.experimental.pallas import tpu as pltpu

INPUT_DIM = 8
OUTPUT_DIM = 10
H1, H2 = 128, 64          # hidden dims
Z_DIM = 4
BN_EPS = 1e-5

LANES = 128

# ---- input slab layout (B, 128) ----------------------------------------------
X_COL = 0                 # x   -> lanes [0, 8)
EPS_COL = 16              # eps -> lanes [16, 20)

# ---- output slab layout (B, 128) ----------------------------------------------
XREC_COL = 0              # x_recon -> lanes [0, 10)
MU_COL = 16               # mu      -> lanes [16, 20)
LV_COL = 20               # logvar  -> lanes [20, 24)

# ---- parameter slab layout (SLAB_ROWS, 128) ------------------------------------
# Every block starts at an 8-aligned row and spans all 128 lanes (zero padded),
# so every in-kernel slab read is a tile-aligned full-lane slice.
R_W1 = 0                      # rows [0,8)     encoder fc1 (8, 128), all real
R_W2 = R_W1 + INPUT_DIM       # rows [8,136)   encoder fc2, real cols [0,64)
R_WMULV = R_W2 + H1           # rows [136,264) fused fc_mu|fc_logvar, real rows [0,64), cols [16,24)
R_WD1 = R_WMULV + H1          # rows [264,272) decoder fc1, real rows [0,4), cols [0,64)
R_WD2 = R_WD1 + 8             # rows [272,400) decoder fc2, real rows [0,64), all cols
R_WD3 = R_WD2 + H1            # rows [400,528) decoder fc3, real cols [0,10)
R_VEC = R_WD3 + H1            # rows [528,538) packed (1,128) vectors
V_G1, V_BE1 = 0, 1            # encoder BN 1 (128 real lanes)
V_G2, V_BE2 = 2, 3            # encoder BN 2 (64 real lanes)
V_BMULV = 4                   # bias_mu|bias_logvar at lanes [16,24)
V_GD1, V_BED1 = 5, 6          # decoder BN 1 (64 real lanes)
V_GD2, V_BED2 = 7, 8          # decoder BN 2 (128 real lanes)
V_BD3 = 9                     # decoder output bias at lanes [0,10)
N_VEC = 10
SLAB_ROWS = ((R_VEC + N_VEC + 7) // 8) * 8   # 544


def _bn_relu(a, gamma, beta):
    """Train-mode BatchNorm1d + ReLU on a full-width (B, 128) activation.

    Padded feature columns carry exact zeros with gamma=beta=0, so they stay
    exactly zero through BN (0 * rsqrt(eps) = 0) and ReLU.
    """
    mean = jnp.mean(a, axis=0, keepdims=True)
    centered = a - mean
    var = jnp.mean(centered * centered, axis=0, keepdims=True)
    scale = gamma * jax.lax.rsqrt(var + BN_EPS)
    return jnp.maximum(centered * scale + beta, 0.0)


def vae_kernel(in_ref, slab_ref, out_ref):
    xe = in_ref[...]                               # (B, 128) packed x | eps
    x = xe[:, X_COL:X_COL + INPUT_DIM]             # (B, 8)
    eps = xe[:, EPS_COL:EPS_COL + Z_DIM]           # (B, 4)

    # --- parameter slab views (all full-lane, 8-aligned row slices) ----------
    w1 = slab_ref[R_W1:R_W1 + INPUT_DIM, :]        # (8, 128)
    w2 = slab_ref[R_W2:R_W2 + H1, :]               # (128, 128)
    wmulv = slab_ref[R_WMULV:R_WMULV + H1, :]      # (128, 128)
    wd1 = slab_ref[R_WD1:R_WD1 + 8, :]             # (8, 128)
    wd2 = slab_ref[R_WD2:R_WD2 + H1, :]            # (128, 128)
    wd3 = slab_ref[R_WD3:R_WD3 + H1, :]            # (128, 128)

    def vec(i):
        return slab_ref[R_VEC + i:R_VEC + i + 1, :]    # (1, 128)

    g1, be1 = vec(V_G1), vec(V_BE1)
    g2, be2 = vec(V_G2), vec(V_BE2)
    bmulv = vec(V_BMULV)
    gd1, bed1 = vec(V_GD1), vec(V_BED1)
    gd2, bed2 = vec(V_GD2), vec(V_BED2)
    bd3 = vec(V_BD3)

    # --- encoder (pre-BN Linear biases dropped: cancel under train-mode BN) --
    h = _bn_relu(jnp.dot(x, w1, preferred_element_type=jnp.float32), g1, be1)
    h = _bn_relu(jnp.dot(h, w2, preferred_element_type=jnp.float32), g2, be2)

    # fused mu|logvar head; real output columns pre-placed at lanes [16, 24)
    mulv = jnp.dot(h, wmulv, preferred_element_type=jnp.float32) + bmulv   # (B, 128)
    mu = mulv[:, MU_COL:MU_COL + Z_DIM]            # (B, 4)
    logvar = mulv[:, LV_COL:LV_COL + Z_DIM]        # (B, 4)

    # --- reparameterize -------------------------------------------------------
    z = mu + eps * jnp.exp(0.5 * logvar)                                   # (B, 4)
    # wd1 rows [4,8) are zero, so the zero-filled tail contributes nothing
    z8 = jnp.concatenate([z, jnp.zeros_like(z)], axis=-1)                  # (B, 8)

    # --- decoder --------------------------------------------------------------
    d = _bn_relu(jnp.dot(z8, wd1, preferred_element_type=jnp.float32), gd1, bed1)
    d = _bn_relu(jnp.dot(d, wd2, preferred_element_type=jnp.float32), gd2, bed2)
    xrec = jnp.dot(d, wd3, preferred_element_type=jnp.float32) + bd3       # (B, 128), lanes [0,10)

    # --- single unmasked full-width store --------------------------------------
    # xrec is zero outside lanes [0,10); mulv is zero outside lanes [16,24).
    out_ref[...] = xrec + mulv


@jax.jit
def vae_forward(x, eps, slab):
    """VAE forward.

    x:   (G, B, INPUT_DIM) or (B, INPUT_DIM)
    eps: (G, B, Z_DIM)     or (B, Z_DIM)
    Each leading group is an independent micro-batch (its own BatchNorm
    statistics), i.e. one PyTorch forward pass per group.
    """
    squeeze = x.ndim == 2
    if squeeze:
        x, eps = x[None], eps[None]
    G, B, _ = x.shape

    # pack x + eps into one lane-dense input slab (one DMA instead of two)
    inp = jnp.zeros((G, B, LANES), jnp.float32)
    inp = inp.at[..., X_COL:X_COL + INPUT_DIM].set(x.astype(jnp.float32))
    inp = inp.at[..., EPS_COL:EPS_COL + Z_DIM].set(eps.astype(jnp.float32))

    # advisory cost estimate (counts the padded 128-lane matmuls actually issued)
    flops = 2 * G * B * LANES * (INPUT_DIM + H1 + H1 + 8 + H1 + H1)
    transcendentals = G * (B * Z_DIM + 4 * LANES)
    bytes_accessed = 4 * (2 * G * B * LANES + SLAB_ROWS * LANES)

    out = pl.pallas_call(
        vae_kernel,
        grid=(G,),
        in_specs=[
            pl.BlockSpec((None, B, LANES), lambda g: (g, 0, 0)),
            # constant block index -> parameter slab DMA'd once, stays resident
            pl.BlockSpec((SLAB_ROWS, LANES), lambda g: (0, 0)),
        ],
        out_specs=pl.BlockSpec((None, B, LANES), lambda g: (g, 0, 0)),
        out_shape=jax.ShapeDtypeStruct((G, B, LANES), jnp.float32),
        compiler_params=pltpu.CompilerParams(
            dimension_semantics=("parallel",),
            vmem_limit_bytes=4 << 20,
        ),
        cost_estimate=pl.CostEstimate(
            flops=flops,
            transcendentals=transcendentals,
            bytes_accessed=bytes_accessed,
        ),
    )(inp, slab)

    x_recon = out[..., XREC_COL:XREC_COL + OUTPUT_DIM]
    mu = out[..., MU_COL:MU_COL + Z_DIM]
    logvar = out[..., LV_COL:LV_COL + Z_DIM]
    if squeeze:
        x_recon, mu, logvar = x_recon[0], mu[0], logvar[0]
    return x_recon, mu, logvar


# -----------------------------------------------------------------------------
# Parameter construction / packing (done once, outside the hot path)
# -----------------------------------------------------------------------------
def init_params(key):
    """Deterministic synthetic parameters; Linear weights pre-transposed to
    (in_features, out_features), BN weight=1 / bias=0 like PyTorch defaults."""
    def lin(key, fan_in, fan_out):
        kw, kb = jax.random.split(key)
        bound = 1.0 / jnp.sqrt(fan_in)
        w = jax.random.uniform(kw, (fan_in, fan_out), jnp.float32, -bound, bound)
        b = jax.random.uniform(kb, (1, fan_out), jnp.float32, -bound, bound)
        return w, b

    def bn(dim):
        return jnp.ones((1, dim), jnp.float32), jnp.zeros((1, dim), jnp.float32)

    keys = jax.random.split(key, 7)
    w1, b1 = lin(keys[0], INPUT_DIM, H1)
    g1, be1 = bn(H1)
    w2, b2 = lin(keys[1], H1, H2)
    g2, be2 = bn(H2)
    wmu, bmu = lin(keys[2], H2, Z_DIM)
    wlv, blv = lin(keys[3], H2, Z_DIM)
    wd1, bd1 = lin(keys[4], Z_DIM, H2)
    gd1, bed1 = bn(H2)
    wd2, bd2 = lin(keys[5], H2, H1)
    gd2, bed2 = bn(H1)
    wd3, bd3 = lin(keys[6], H1, OUTPUT_DIM)
    return (w1, b1, g1, be1, w2, b2, g2, be2, wmu, bmu, wlv, blv,
            wd1, bd1, gd1, bed1, wd2, bd2, gd2, bed2, wd3, bd3)


def pack_params(params):
    """One-time packing of every weight matrix and vector into a single
    lane-dense (SLAB_ROWS, 128) f32 slab (two input DMAs total at run time)."""
    (w1, b1, g1, be1, w2, b2, g2, be2, wmu, bmu, wlv, blv,
     wd1, bd1, gd1, bed1, wd2, bd2, gd2, bed2, wd3, bd3) = params
    del b1, b2, bd1, bd2   # pre-BN biases cancel exactly under train-mode BN

    def block(w, rows, col_off=0):
        out = jnp.zeros((rows, LANES), jnp.float32)
        return out.at[:w.shape[0], col_off:col_off + w.shape[1]].set(w)

    def vrow(v, col_off=0):
        v = v.reshape(1, -1)
        out = jnp.zeros((1, LANES), jnp.float32)
        return out.at[:, col_off:col_off + v.shape[1]].set(v)

    wmulv = jnp.concatenate([wmu, wlv], axis=1)   # (H2, 2*Z_DIM)
    bmulv = jnp.concatenate([bmu, blv], axis=1)   # (1, 2*Z_DIM)

    slab = jnp.concatenate(
        [
            block(w1, INPUT_DIM),                 # rows   0:8
            block(w2, H1),                        # rows   8:136
            block(wmulv, H1, col_off=MU_COL),     # rows 136:264
            block(wd1, 8),                        # rows 264:272
            block(wd2, H1),                       # rows 272:400
            block(wd3, H1, col_off=XREC_COL),     # rows 400:528
            vrow(g1), vrow(be1),
            vrow(g2), vrow(be2),
            vrow(bmulv, col_off=MU_COL),
            vrow(gd1), vrow(bed1),
            vrow(gd2), vrow(bed2),
            vrow(bd3, col_off=XREC_COL),
            jnp.zeros((SLAB_ROWS - (R_VEC + N_VEC), LANES), jnp.float32),
        ],
        axis=0,
    )
    assert slab.shape == (SLAB_ROWS, LANES)
    return slab


# -----------------------------------------------------------------------------
# Pure-JAX reference (identical math, raw / unpacked params, biases kept)
# -----------------------------------------------------------------------------
def reference_forward(x, eps, params):
    (w1, b1, g1, be1, w2, b2, g2, be2, wmu, bmu, wlv, blv,
     wd1, bd1, gd1, bed1, wd2, bd2, gd2, bed2, wd3, bd3) = params

    def bn(a, g, b):
        m = jnp.mean(a, axis=0, keepdims=True)
        v = jnp.mean((a - m) ** 2, axis=0, keepdims=True)
        return g * (a - m) / jnp.sqrt(v + BN_EPS) + b

    h = jnp.maximum(bn(x @ w1 + b1, g1, be1), 0.0)
    h = jnp.maximum(bn(h @ w2 + b2, g2, be2), 0.0)
    mu = h @ wmu + bmu
    logvar = h @ wlv + blv
    z = mu + eps * jnp.exp(0.5 * logvar)
    d = jnp.maximum(bn(z @ wd1 + bd1, gd1, bed1), 0.0)
    d = jnp.maximum(bn(d @ wd2 + bd2, gd2, bed2), 0.0)
    return d @ wd3 + bd3, mu, logvar


if __name__ == "__main__":
    num_groups, batch = 4, 8
    root = jax.random.PRNGKey(0)
    k_x, k_eps, k_params = jax.random.split(root, 3)

    x = jax.random.normal(k_x, (num_groups, batch, INPUT_DIM), jnp.float32)
    # torch.randn_like noise is sampled here (deterministically) and fed in.
    eps = jax.random.normal(k_eps, (num_groups, batch, Z_DIM), jnp.float32)
    params = init_params(k_params)
    slab = pack_params(params)

    # grouped path: grid over independent micro-batches, BN per group
    x_recon, mu, logvar = vae_forward(x, eps, slab)
    jax.block_until_ready((x_recon, mu, logvar))

    xr_ref, mu_ref, lv_ref = jax.vmap(
        lambda xg, eg: reference_forward(xg, eg, params))(x, eps)
    assert x_recon.shape == (num_groups, batch, OUTPUT_DIM)
    assert mu.shape == (num_groups, batch, Z_DIM)
    assert logvar.shape == (num_groups, batch, Z_DIM)
    assert jnp.allclose(x_recon, xr_ref, atol=1e-4, rtol=1e-4)
    assert jnp.allclose(mu, mu_ref, atol=1e-4, rtol=1e-4)
    assert jnp.allclose(logvar, lv_ref, atol=1e-4, rtol=1e-4)

    # module-equivalent 2-D path: a single batch of 8, BN over the whole batch
    xr2, mu2, lv2 = vae_forward(x[0], eps[0], slab)
    jax.block_until_ready((xr2, mu2, lv2))
    xr2_ref, mu2_ref, lv2_ref = reference_forward(x[0], eps[0], params)
    assert xr2.shape == (batch, OUTPUT_DIM)
    assert jnp.allclose(xr2, xr2_ref, atol=1e-4, rtol=1e-4)
    assert jnp.allclose(mu2, mu2_ref, atol=1e-4, rtol=1e-4)
    assert jnp.allclose(lv2, lv2_ref, atol=1e-4, rtol=1e-4)

    # TODO(synk): optional bf16 weight/activation matmul path (keep f32 BN/EUP
    # math) once tolerance is re-validated on the target generation.
    print("KERNEL_OK")
</pallas_src>

<mosaic_0001>
module attributes {stable_mosaic.version = 11 : i64} {
  func.func @vae_kernel(%arg0: i32, %arg1: memref<1x8x128xf32, #tpu.memory_space<vmem>>, %arg2: memref<544x128xf32, #tpu.memory_space<vmem>>, %arg3: memref<1x8x128xf32, #tpu.memory_space<vmem>>) attributes {dimension_semantics = [#tpu.dimension_semantics<parallel>], iteration_bounds = array<i64: 4>, scalar_prefetch = 0 : i64, scratch_operands = 0 : i64, tpu.core_type = #tpu.core_type<tc>, window_params = [{transform_indices = @transform_0, window_bounds = array<i64: 1, 8, 128>}, {pipeline_mode = #tpu.pipeline_mode<synchronous>, transform_indices = @transform_1, window_bounds = array<i64: 544, 128>}, {transform_indices = @transform_2, window_bounds = array<i64: 1, 8, 128>}]} {
    %c0 = arith.constant 0 : index
    %c0_0 = arith.constant 0 : index
    %c0_1 = arith.constant 0 : index
    %0 = vector.load %arg1[%c0, %c0_0, %c0_1] : memref<1x8x128xf32, #tpu.memory_space<vmem>>, vector<1x8x128xf32>
    %1 = vector.shape_cast %0 : vector<1x8x128xf32> to vector<8x128xf32>
    %2 = vector.extract_strided_slice %1 {offsets = [0, 0], sizes = [8, 8], strides = [1, 1]} : vector<8x128xf32> to vector<8x8xf32>
    %3 = vector.extract_strided_slice %1 {offsets = [0, 16], sizes = [8, 4], strides = [1, 1]} : vector<8x128xf32> to vector<8x4xf32>
    %c0_2 = arith.constant 0 : index
    %c0_3 = arith.constant 0 : index
    %4 = vector.load %arg2[%c0_2, %c0_3] : memref<544x128xf32, #tpu.memory_space<vmem>>, vector<8x128xf32>
    %c8 = arith.constant 8 : index
    %c0_4 = arith.constant 0 : index
    %5 = vector.load %arg2[%c8, %c0_4] : memref<544x128xf32, #tpu.memory_space<vmem>>, vector<128x128xf32>
    %c136 = arith.constant 136 : index
    %c0_5 = arith.constant 0 : index
    %6 = vector.load %arg2[%c136, %c0_5] : memref<544x128xf32, #tpu.memory_space<vmem>>, vector<128x128xf32>
    %c264 = arith.constant 264 : index
    %c0_6 = arith.constant 0 : index
    %7 = vector.load %arg2[%c264, %c0_6] : memref<544x128xf32, #tpu.memory_space<vmem>>, vector<8x128xf32>
    %c272 = arith.constant 272 : index
    %c0_7 = arith.constant 0 : index
    %8 = vector.load %arg2[%c272, %c0_7] : memref<544x128xf32, #tpu.memory_space<vmem>>, vector<128x128xf32>
    %c400 = arith.constant 400 : index
    %c0_8 = arith.constant 0 : index
    %9 = vector.load %arg2[%c400, %c0_8] : memref<544x128xf32, #tpu.memory_space<vmem>>, vector<128x128xf32>
    %c528 = arith.constant 528 : index
    %c0_9 = arith.constant 0 : index
    %10 = vector.load %arg2[%c528, %c0_9] : memref<544x128xf32, #tpu.memory_space<vmem>>, vector<1x128xf32>
    %c529 = arith.constant 529 : index
    %c0_10 = arith.constant 0 : index
    %11 = vector.load %arg2[%c529, %c0_10] : memref<544x128xf32, #tpu.memory_space<vmem>>, vector<1x128xf32>
    %c530 = arith.constant 530 : index
    %c0_11 = arith.constant 0 : index
    %12 = vector.load %arg2[%c530, %c0_11] : memref<544x128xf32, #tpu.memory_space<vmem>>, vector<1x128xf32>
    %c531 = arith.constant 531 : index
    %c0_12 = arith.constant 0 : index
    %13 = vector.load %arg2[%c531, %c0_12] : memref<544x128xf32, #tpu.memory_space<vmem>>, vector<1x128xf32>
    %c532 = arith.constant 532 : index
    %c0_13 = arith.constant 0 : index
    %14 = vector.load %arg2[%c532, %c0_13] : memref<544x128xf32, #tpu.memory_space<vmem>>, vector<1x128xf32>
    %c533 = arith.constant 533 : index
    %c0_14 = arith.constant 0 : index
    %15 = vector.load %arg2[%c533, %c0_14] : memref<544x128xf32, #tpu.memory_space<vmem>>, vector<1x128xf32>
    %c534 = arith.constant 534 : index
    %c0_15 = arith.constant 0 : index
    %16 = vector.load %arg2[%c534, %c0_15] : memref<544x128xf32, #tpu.memory_space<vmem>>, vector<1x128xf32>
    %c535 = arith.constant 535 : index
    %c0_16 = arith.constant 0 : index
    %17 = vector.load %arg2[%c535, %c0_16] : memref<544x128xf32, #tpu.memory_space<vmem>>, vector<1x128xf32>
    %c536 = arith.constant 536 : index
    %c0_17 = arith.constant 0 : index
    %18 = vector.load %arg2[%c536, %c0_17] : memref<544x128xf32, #tpu.memory_space<vmem>>, vector<1x128xf32>
    %c537 = arith.constant 537 : index
    %c0_18 = arith.constant 0 : index
    %19 = vector.load %arg2[%c537, %c0_18] : memref<544x128xf32, #tpu.memory_space<vmem>>, vector<1x128xf32>
    %cst = arith.constant dense<0.000000e+00> : vector<8x128xf32>
    %20 = tpu.matmul %2, %4, %cst {dimension_numbers = #tpu.dot_dimension_numbers<[1], [0], [0], [1], [0, 0, 1, 1], [], []>} : vector<8x8xf32>, vector<8x128xf32>, vector<8x128xf32> -> vector<8x128xf32>
    %cst_19 = arith.constant dense<0.000000e+00> : vector<128xf32>
    %21 = vector.multi_reduction <add>, %20, %cst_19 [0] : vector<8x128xf32> to vector<128xf32>
    %22 = vector.shape_cast %21 : vector<128xf32> to vector<1x128xf32>
    %cst_20 = arith.constant 8.000000e+00 : f32
    %23 = vector.broadcast %cst_20 : f32 to vector<1x128xf32>
    %24 = arith.divf %22, %23 : vector<1x128xf32>
    %25 = vector.broadcast %24 : vector<1x128xf32> to vector<8x128xf32>
    %26 = arith.subf %20, %25 : vector<8x128xf32>
    %27 = arith.mulf %26, %26 : vector<8x128xf32>
    %cst_21 = arith.constant dense<0.000000e+00> : vector<128xf32>
    %28 = vector.multi_reduction <add>, %27, %cst_21 [0] : vector<8x128xf32> to vector<128xf32>
    %29 = vector.shape_cast %28 : vector<128xf32> to vector<1x128xf32>
    %cst_22 = arith.constant 8.000000e+00 : f32
    %30 = vector.broadcast %cst_22 : f32 to vector<1x128xf32>
    %31 = arith.divf %29, %30 : vector<1x128xf32>
    %cst_23 = arith.constant 9.99999974E-6 : f32
    %32 = vector.broadcast %cst_23 : f32 to vector<1x128xf32>
    %33 = arith.addf %31, %32 : vector<1x128xf32>
    %34 = math.rsqrt %33 : vector<1x128xf32>
    %35 = arith.mulf %10, %34 : vector<1x128xf32>
    %36 = vector.broadcast %35 : vector<1x128xf32> to vector<8x128xf32>
    %37 = arith.mulf %26, %36 : vector<8x128xf32>
    %38 = vector.broadcast %11 : vector<1x128xf32> to vector<8x128xf32>
    %39 = arith.addf %37, %38 : vector<8x128xf32>
    %cst_24 = arith.constant 0.000000e+00 : f32
    %40 = vector.broadcast %cst_24 : f32 to vector<8x128xf32>
    %41 = arith.maximumf %39, %40 : vector<8x128xf32>
    %cst_25 = arith.constant dense<0.000000e+00> : vector<8x128xf32>
    %42 = tpu.matmul %41, %5, %cst_25 {dimension_numbers = #tpu.dot_dimension_numbers<[1], [0], [0], [1], [0, 0, 1, 1], [], []>} : vector<8x128xf32>, vector<128x128xf32>, vector<8x128xf32> -> vector<8x128xf32>
    %cst_26 = arith.constant dense<0.000000e+00> : vector<128xf32>
    %43 = vector.multi_reduction <add>, %42, %cst_26 [0] : vector<8x128xf32> to vector<128xf32>
    %44 = vector.shape_cast %43 : vector<128xf32> to vector<1x128xf32>
    %cst_27 = arith.constant 8.000000e+00 : f32
    %45 = vector.broadcast %cst_27 : f32 to vector<1x128xf32>
    %46 = arith.divf %44, %45 : vector<1x128xf32>
    %47 = vector.broadcast %46 : vector<1x128xf32> to vector<8x128xf32>
    %48 = arith.subf %42, %47 : vector<8x128xf32>
    %49 = arith.mulf %48, %48 : vector<8x128xf32>
    %cst_28 = arith.constant dense<0.000000e+00> : vector<128xf32>
    %50 = vector.multi_reduction <add>, %49, %cst_28 [0] : vector<8x128xf32> to vector<128xf32>
    %51 = vector.shape_cast %50 : vector<128xf32> to vector<1x128xf32>
    %cst_29 = arith.constant 8.000000e+00 : f32
    %52 = vector.broadcast %cst_29 : f32 to vector<1x128xf32>
    %53 = arith.divf %51, %52 : vector<1x128xf32>
    %cst_30 = arith.constant 9.99999974E-6 : f32
    %54 = vector.broadcast %cst_30 : f32 to vector<1x128xf32>
    %55 = arith.addf %53, %54 : vector<1x128xf32>
    %56 = math.rsqrt %55 : vector<1x128xf32>
    %57 = arith.mulf %12, %56 : vector<1x128xf32>
    %58 = vector.broadcast %57 : vector<1x128xf32> to vector<8x128xf32>
    %59 = arith.mulf %48, %58 : vector<8x128xf32>
    %60 = vector.broadcast %13 : vector<1x128xf32> to vector<8x128xf32>
    %61 = arith.addf %59, %60 : vector<8x128xf32>
    %cst_31 = arith.constant 0.000000e+00 : f32
    %62 = vector.broadcast %cst_31 : f32 to vector<8x128xf32>
    %63 = arith.maximumf %61, %62 : vector<8x128xf32>
    %cst_32 = arith.constant dense<0.000000e+00> : vector<8x128xf32>
    %64 = tpu.matmul %63, %6, %cst_32 {dimension_numbers = #tpu.dot_dimension_numbers<[1], [0], [0], [1], [0, 0, 1, 1], [], []>} : vector<8x128xf32>, vector<128x128xf32>, vector<8x128xf32> -> vector<8x128xf32>
    %65 = vector.broadcast %14 : vector<1x128xf32> to vector<8x128xf32>
    %66 = arith.addf %64, %65 : vector<8x128xf32>
    %67 = vector.extract_strided_slice %66 {offsets = [0, 16], sizes = [8, 4], strides = [1, 1]} : vector<8x128xf32> to vector<8x4xf32>
    %68 = vector.extract_strided_slice %66 {offsets = [0, 20], sizes = [8, 4], strides = [1, 1]} : vector<8x128xf32> to vector<8x4xf32>
    %cst_33 = arith.constant 5.000000e-01 : f32
    %69 = vector.broadcast %cst_33 : f32 to vector<8x4xf32>
    %70 = arith.mulf %69, %68 : vector<8x4xf32>
    %71 = math.exp %70 : vector<8x4xf32>
    %72 = arith.mulf %3, %71 : vector<8x4xf32>
    %73 = arith.addf %67, %72 : vector<8x4xf32>
    %cst_34 = arith.constant 0.000000e+00 : f32
    %74 = vector.broadcast %cst_34 : f32 to vector<8x4xf32>
    %75 = tpu.concatenate %73, %74 in 1 : vector<8x4xf32>, vector<8x4xf32> -> vector<8x8xf32>
    %cst_35 = arith.constant dense<0.000000e+00> : vector<8x128xf32>
    %76 = tpu.matmul %75, %7, %cst_35 {dimension_numbers = #tpu.dot_dimension_numbers<[1], [0], [0], [1], [0, 0, 1, 1], [], []>} : vector<8x8xf32>, vector<8x128xf32>, vector<8x128xf32> -> vector<8x128xf32>
    %cst_36 = arith.constant dense<0.000000e+00> : vector<128xf32>
    %77 = vector.multi_reduction <add>, %76, %cst_36 [0] : vector<8x128xf32> to vector<128xf32>
    %78 = vector.shape_cast %77 : vector<128xf32> to vector<1x128xf32>
    %cst_37 = arith.constant 8.000000e+00 : f32
    %79 = vector.broadcast %cst_37 : f32 to vector<1x128xf32>
    %80 = arith.divf %78, %79 : vector<1x128xf32>
    %81 = vector.broadcast %80 : vector<1x128xf32> to vector<8x128xf32>
    %82 = arith.subf %76, %81 : vector<8x128xf32>
    %83 = arith.mulf %82, %82 : vector<8x128xf32>
    %cst_38 = arith.constant dense<0.000000e+00> : vector<128xf32>
    %84 = vector.multi_reduction <add>, %83, %cst_38 [0] : vector<8x128xf32> to vector<128xf32>
    %85 = vector.shape_cast %84 : vector<128xf32> to vector<1x128xf32>
    %cst_39 = arith.constant 8.000000e+00 : f32
    %86 = vector.broadcast %cst_39 : f32 to vector<1x128xf32>
    %87 = arith.divf %85, %86 : vector<1x128xf32>
    %cst_40 = arith.constant 9.99999974E-6 : f32
    %88 = vector.broadcast %cst_40 : f32 to vector<1x128xf32>
    %89 = arith.addf %87, %88 : vector<1x128xf32>
    %90 = math.rsqrt %89 : vector<1x128xf32>
    %91 = arith.mulf %15, %90 : vector<1x128xf32>
    %92 = vector.broadcast %91 : vector<1x128xf32> to vector<8x128xf32>
    %93 = arith.mulf %82, %92 : vector<8x128xf32>
    %94 = vector.broadcast %16 : vector<1x128xf32> to vector<8x128xf32>
    %95 = arith.addf %93, %94 : vector<8x128xf32>
    %cst_41 = arith.constant 0.000000e+00 : f32
    %96 = vector.broadcast %cst_41 : f32 to vector<8x128xf32>
    %97 = arith.maximumf %95, %96 : vector<8x128xf32>
    %cst_42 = arith.constant dense<0.000000e+00> : vector<8x128xf32>
    %98 = tpu.matmul %97, %8, %cst_42 {dimension_numbers = #tpu.dot_dimension_numbers<[1], [0], [0], [1], [0, 0, 1, 1], [], []>} : vector<8x128xf32>, vector<128x128xf32>, vector<8x128xf32> -> vector<8x128xf32>
    %cst_43 = arith.constant dense<0.000000e+00> : vector<128xf32>
    %99 = vector.multi_reduction <add>, %98, %cst_43 [0] : vector<8x128xf32> to vector<128xf32>
    %100 = vector.shape_cast %99 : vector<128xf32> to vector<1x128xf32>
    %cst_44 = arith.constant 8.000000e+00 : f32
    %101 = vector.broadcast %cst_44 : f32 to vector<1x128xf32>
    %102 = arith.divf %100, %101 : vector<1x128xf32>
    %103 = vector.broadcast %102 : vector<1x128xf32> to vector<8x128xf32>
    %104 = arith.subf %98, %103 : vector<8x128xf32>
    %105 = arith.mulf %104, %104 : vector<8x128xf32>
    %cst_45 = arith.constant dense<0.000000e+00> : vector<128xf32>
    %106 = vector.multi_reduction <add>, %105, %cst_45 [0] : vector<8x128xf32> to vector<128xf32>
    %107 = vector.shape_cast %106 : vector<128xf32> to vector<1x128xf32>
    %cst_46 = arith.constant 8.000000e+00 : f32
    %108 = vector.broadcast %cst_46 : f32 to vector<1x128xf32>
    %109 = arith.divf %107, %108 : vector<1x128xf32>
    %cst_47 = arith.constant 9.99999974E-6 : f32
    %110 = vector.broadcast %cst_47 : f32 to vector<1x128xf32>
    %111 = arith.addf %109, %110 : vector<1x128xf32>
    %112 = math.rsqrt %111 : vector<1x128xf32>
    %113 = arith.mulf %17, %112 : vector<1x128xf32>
    %114 = vector.broadcast %113 : vector<1x128xf32> to vector<8x128xf32>
    %115 = arith.mulf %104, %114 : vector<8x128xf32>
    %116 = vector.broadcast %18 : vector<1x128xf32> to vector<8x128xf32>
    %117 = arith.addf %115, %116 : vector<8x128xf32>
    %cst_48 = arith.constant 0.000000e+00 : f32
    %118 = vector.broadcast %cst_48 : f32 to vector<8x128xf32>
    %119 = arith.maximumf %117, %118 : vector<8x128xf32>
    %cst_49 = arith.constant dense<0.000000e+00> : vector<8x128xf32>
    %120 = tpu.matmul %119, %9, %cst_49 {dimension_numbers = #tpu.dot_dimension_numbers<[1], [0], [0], [1], [0, 0, 1, 1], [], []>} : vector<8x128xf32>, vector<128x128xf32>, vector<8x128xf32> -> vector<8x128xf32>
    %121 = vector.broadcast %19 : vector<1x128xf32> to vector<8x128xf32>
    %122 = arith.addf %120, %121 : vector<8x128xf32>
    %123 = arith.addf %122, %66 : vector<8x128xf32>
    %c0_50 = arith.constant 0 : index
    %c0_51 = arith.constant 0 : index
    %c0_52 = arith.constant 0 : index
    %124 = vector.load %arg3[%c0_50, %c0_51, %c0_52] : memref<1x8x128xf32, #tpu.memory_space<vmem>>, vector<1x8x128xf32>
    %125 = vector.shape_cast %124 : vector<1x8x128xf32> to vector<8x128xf32>
    %126 = vector.shape_cast %123 : vector<8x128xf32> to vector<1x8x128xf32>
    tpu.vector_store %arg3[%c0_50, %c0_51, %c0_52], %126 {strides = array<i32>} : memref<1x8x128xf32, #tpu.memory_space<vmem>>, vector<1x8x128xf32>,
    return
  }
  func.func @transform_0(%arg0: i32) -> (i32, i32, i32) {
    %c0_i32 = arith.constant 0 : i32
    %c0_i32_0 = arith.constant 0 : i32
    %c0_i32_1 = arith.constant 0 : i32
    return %arg0, %c0_i32, %c0_i32_0 : i32, i32, i32
  }
  func.func @transform_1(%arg0: i32) -> (i32, i32) {
    %c0_i32 = arith.constant 0 : i32
    %c0_i32_0 = arith.constant 0 : i32
    %c0_i32_1 = arith.constant 0 : i32
    return %c0_i32, %c0_i32_0 : i32, i32
  }
  func.func @transform_2(%arg0: i32) -> (i32, i32, i32) {
    %c0_i32 = arith.constant 0 : i32
    %c0_i32_0 = arith.constant 0 : i32
    %c0_i32_1 = arith.constant 0 : i32
    return %arg0, %c0_i32, %c0_i32_0 : i32, i32, i32
  }
}

</mosaic_0001>

<bundles_post_ra>
// kernel: vae_forward.1
= control target key start
LH: loop header
LB: loop body
LE: loop exit
PB: predicated region body
PF: predicated region fallthrough
CT: control target
= control target key end

     0   :  { %7 = vsyncpa [#allocation3], 0  ;;  %s701_s9 = smov 0   ;;  %s749_s0 = inlined_call_operand.vmem [shape: f32[4,8,128], index: 0, kind: input, shape index: {}]   ;;  %s750_s1 = inlined_call_operand.hbm [shape: f32[544,128], index: 1, kind: input, shape index: {}]   ;;  %s751_s2 = inlined_call_operand.vmem [shape: f32[4,8,128], index: 2, kind: output, shape index: {}]  }
   0x1 LB: > { %s102_s12 = sshll.u32 %s750_s1, 4  ;;  %s583_s13 = sadd.s32 4294967295, %s678_s9   ;;  %s678_s9 = sphi %s701_s9, %s13_s9   ;;  %s103_s12 = int_to_ptr.hbm [resolvable:$true] %s102_s12 }
   0x2   : > { %p585_p0 = scmp.ge.s32.totalorder %s678_s9, 1  ;;  %p91_p1 = scmp.lt.s32.totalorder %s678_s9, 5 }
   0x3   : > { %p604_p2 = scmp.eq.s32.totalorder %s583_s13, 0  ;;  %s680_s14 = smov [#allocation2]  }
   0x4   : > { %p92_p3 = pnand %p585_p0, %p91_p1  ;;  %s104_s15 = sshll.u32 %s680_s14, 4  ;;  %s105_s15 = int_to_ptr.vmem [resolvable:$true] %s104_s15 }
   0x5   : > { %s681_s16 = smov 128   ;;  %s682_s17 = smov 8  }
   0x6   : > { %p600_p4 = pneg %p92_p3  ;;  %127 = sbr.rel (%p92_p3) target bundleno = 1293 (0x50d), region = 28 }
   0x8   : > { %p601_p5 = pnand %p604_p2, %p600_p4 }
   0xa   : > { %603 = dma.hbm_to_vmem [thread:$0]  (!%p601_p5), %s103_s12, 8704, %s105_s15, [#allocation3], %s681_s16, %s681_s16, %s682_s17  }
   0xb   : > { %673 = dma.done.wait (%p604_p2), [#allocation3], 8704  }
   0xc   : > { %675 = vsyncadd (%p604_p2), [#allocation3], 4294958592  ;;  %p148_p6 = scmp.lt.s32.totalorder %s583_s13, 3  ;;  %vm233_vm0 = vcmask 64512   ;;  %v157_v0 = vld [vmem:[#allocation2] sm:$0xff]  ;;  %v683_v2 = vmov 8.0  }
   0xd   : > { %252 = vmatpush.msra.mxu0 %v157_v0  ;;  %626 = vrcp.f32 %v683_v2  ;;  %v173_v6 = vld [vmem:[#allocation2 + $0x80] sm:$0xff]  ;;  %v172_v9 = vld [vmem:[#allocation2 + $0x78] sm:$0xff]  ;;  %v171_v12 = vld [vmem:[#allocation2 + $0x70] sm:$0xff]  ;;  %s684_s22 = smov 124   ;;  %s685_s23 = smov 112   ;;  %vm384_vm8 = vcmask 31744  }
   0xe   : > { %s753_s13 = smov (!%p148_p6, %s583_s13), 3  ;;  %297 = vmatpush.msra.mxu1 %v173_v6  ;;  %v170_v13 = vld [vmem:[#allocation2 + $0x68] sm:$0xff]  ;;  %v169_v15 = vld [vmem:[#allocation2 + $0x60] sm:$0xff]  ;;  %v168_v18 = vld [vmem:[#allocation2 + $0x58] sm:$0xff] }
   0xf   : > { %s590_s18 = sshll.u32 %s753_s13, 3  ;;  %v167_v20 = vld [vmem:[#allocation2 + $0x50] sm:$0xff]  ;;  %v166_v23 = vld [vmem:[#allocation2 + $0x48] sm:$0xff]  ;;  %v165_v25 = vld [vmem:[#allocation2 + $0x40] sm:$0xff] }
  0x10   : > { %s151_s21 = scalar_lea.vmem %s749_s0, %s590_s18  ;;  %298 = vmatpush.msra.mxu1 %v172_v9  ;;  %v164_v27 = vld [vmem:[#allocation2 + $0x38] sm:$0xff]  ;;  %v163_v29 = vld [vmem:[#allocation2 + $0x30] sm:$0xff]  ;;  %v162_v31 = vld [vmem:[#allocation2 + $0x28] sm:$0xff]  ;;  %s155_s26 = scalar_lea.vmem %s751_s2, %s590_s18 }
  0x11   : > { %v720_v1 = vld [vmem:[%s151_s21] sm:$0xff]  ;;  %v160_v35 = vld [vmem:[#allocation2 + $0x18] sm:$0xff]  ;;  %v159_v37 = vld [vmem:[#allocation2 + $0x10] sm:$0xff] }
  0x12   : > { %592 = vmatmul.msk.f32.vlgmr.msra.gmra.mxu0 %vm233_vm0, %v720_v1  ;;  %299 = vmatpush.msra.mxu1 %v171_v12  ;;  %v161_v33 = vld [vmem:[#allocation2 + $0x20] sm:$0xff]  ;;  %v158_v39 = vld [vmem:[#allocation2 + $0x8] sm:$0xff]  ;;  %v223_v48 = vld [vmem:[#allocation2 + $0x210] sm:$0x1] }
  0x13   : > { %v627_v3 = vpop.eup %626  ;;  %v620_v53 = vld [vmem:[#allocation2 + $0x211] ss:$0 sm:$0xff]  ;;  %v189_v57 = vld [vmem:[#allocation2 + $0x100] sm:$0xff]  ;;  %v188_v60 = vld [vmem:[#allocation2 + $0xf8] sm:$0xff] }
  0x14   : > { %v264_v4 = vmul.f32 8.0, %v627_v3  ;;  %300 = vmatpush.msra.mxu1 %v170_v13  ;;  %vm268_vm1 = vweird.f32 %v627_v3  ;;  %351 = vmatpush.msra.mxu2 %v189_v57  ;;  %v187_v62 = vld [vmem:[#allocation2 + $0xf0] sm:$0xff]  ;;  %v186_v0 = vld [vmem:[#allocation2 + $0xe8] sm:$0xff]  ;;  %v180_v13 = vld [vmem:[#allocation2 + $0xb8] sm:$0xff] }
  0x15   : > { %v182_v9 = vld [vmem:[#allocation2 + $0xc8] sm:$0xff] }
  0x16   : > { %v265_v5 = vsub.f32 1.0, %v264_v4  ;;  %301 = vmatpush.msra.mxu1 %v169_v15  ;;  %352 = vmatpush.msra.mxu2 %v188_v60  ;;  %v179_v15 = vld [vmem:[#allocation2 + $0xb0] sm:$0xff]  ;;  %v204_v60 = vld [vmem:[#allocation2 + $0x178] sm:$0xff] }
  0x18   : > { %v266_v10 = vmul.f32 %v627_v3, %v265_v5  ;;  %302 = vmatpush.msra.mxu1 %v168_v18  ;;  %353 = vmatpush.msra.mxu2 %v187_v62  ;;  %v184_v5 = vld [vmem:[#allocation2 + $0xd8] sm:$0xff] }
  0x1a   : > { %v267_v16 = vadd.f32 %v627_v3, %v266_v10  ;;  %303 = vmatpush.msra.mxu1 %v167_v20  ;;  %354 = vmatpush.msra.mxu2 %v186_v0 }
  0x1c   : > { %v724_v21 = vsel %vm268_vm1, %v627_v3, %v267_v16  ;;  %304 = vmatpush.msra.mxu1 %v166_v23  ;;  %v185_v3 = vld [vmem:[#allocation2 + $0xe0] sm:$0xff]  ;;  %v175_v23 = vld [vmem:[#allocation2 + $0x90] sm:$0xff] }
  0x1d   : > { %355 = vmatpush.msra.mxu2 %v185_v3 }
  0x1e   : > { %305 = vmatpush.msra.mxu1 %v165_v25  ;;  %v174_v25 = vld [vmem:[#allocation2 + $0x88] sm:$0xff] }
  0x1f   : > { %356 = vmatpush.msra.mxu2 %v184_v5 }
  0x20   : > { %306 = vmatpush.msra.mxu1 %v164_v27 }
  0x22   : > { %307 = vmatpush.msra.mxu1 %v163_v29 }
  0x24   : > { %308 = vmatpush.msra.mxu1 %v162_v31 }
  0x26   : > { %309 = vmatpush.msra.mxu1 %v161_v33 }
  0x28   : > { %310 = vmatpush.msra.mxu1 %v160_v35 }
  0x2a   : > { %311 = vmatpush.msra.mxu1 %v159_v37 }
  0x2c   : > { %312 = vmatpush.msra.mxu1 %v158_v39  ;;  %v621_v39 = vld [vmem:[#allocation2 + $0x213] ss:$0 sm:$0xff] }
  0x8f   : > { %v254_v7 = vpop.f32.mrf.mxu0 }
  0x90   : > { %v257_v8 = vrot.slane %v254_v7, 4 }
  0x92   : > { %v258_v11 = vadd.f32 %v257_v8, %v254_v7 }
  0x94   : > { %v259_v14 = vrot.slane %v258_v11, 2 }
  0x96   : > { %v260_v17 = vadd.f32 %v259_v14, %v258_v11  ;;  %v181_v11 = vld [vmem:[#allocation2 + $0xc0] sm:$0xff] }
  0x98   : > { %v261_v19 = vrot.slane %v260_v17, 1 }
  0x9a   : > { %v262_v22 = vadd.f32 %v261_v19, %v260_v17  ;;  %v178_v17 = vld [vmem:[#allocation2 + $0xa8] sm:$0xff]  ;;  %v177_v19 = vld [vmem:[#allocation2 + $0xa0] sm:$0xff] }
  0x9c   : > { %v270_v24 = vmul.f32 %v724_v21, %v262_v22  ;;  %v176_v22 = vld [vmem:[#allocation2 + $0x98] sm:$0xff] }
  0x9e   : > { %v271_v26 = vsub.f32 %v254_v7, %v270_v24  ;;  %v183_v7 = vld [vmem:[#allocation2 + $0xd0] sm:$0xff] }
  0x9f   : > { %357 = vmatpush.msra.mxu2 %v183_v7 }
  0xa0   : > { %v272_v28 = vmul.f32 %v271_v26, %v271_v26 }
  0xa1   : > { %358 = vmatpush.msra.mxu2 %v182_v9 }
  0xa2   : > { %v273_v30 = vrot.slane %v272_v28, 4 }
  0xa3   : > { %359 = vmatpush.msra.mxu2 %v181_v11 }
  0xa4   : > { %v274_v32 = vadd.f32 %v273_v30, %v272_v28 }
  0xa5   : > { %360 = vmatpush.msra.mxu2 %v180_v13 }
  0xa6   : > { %v275_v34 = vrot.slane %v274_v32, 2 }
  0xa7   : > { %361 = vmatpush.msra.mxu2 %v179_v15 }
  0xa8   : > { %v276_v36 = vadd.f32 %v275_v34, %v274_v32  ;;  %v225_v34 = vld [vmem:[#allocation2 + $0x212] sm:$0x1] }
  0xa9   : > { %362 = vmatpush.msra.mxu2 %v178_v17 }
  0xaa   : > { %v277_v38 = vrot.slane %v276_v36, 1 }
  0xab   : > { %363 = vmatpush.msra.mxu2 %v177_v19  ;;  %v192_v19 = vld [vmem:[#allocation2 + $0x118] sm:$0xff] }
  0xac   : > { %v278_v40 = vadd.f32 %v277_v38, %v276_v36 }
  0xad   : > { %364 = vmatpush.msra.mxu2 %v176_v22  ;;  %v191_v22 = vld [vmem:[#allocation2 + $0x110] sm:$0xff] }
  0xae   : > { %v279_v41 = vmul.f32 %v278_v40, %v724_v21 }
  0xaf   : > { %365 = vmatpush.msra.mxu2 %v175_v23 }
  0xb0   : > { %v280_v42 = vadd.f32 1e-05, %v279_v41 }
  0xb1   : > { %366 = vmatpush.msra.mxu2 %v174_v25 }
  0xb2   : > { %628 = vrsqrt.f32 %v280_v42  ;;  %vm287_vm3 = vweird.f32 %v280_v42 }
  0xb8   : > { %v629_v43 = vpop.eup %628 }
  0xb9   : > { %v282_v44 = vmul.f32 %v629_v43, %v280_v42  ;;  %vm288_vm2 = vweird.f32 %v629_v43 }
  0xba   : > { %vm289_vm4 = vmor %vm287_vm3, %vm288_vm2 }
  0xbb   : > { %v283_v45 = vmul.f32 %v629_v43, %v282_v44 }
  0xbd   : > { %v284_v46 = vmul.f32 0.5, %v283_v45 }
  0xbf   : > { %v285_v47 = vsub.f32 1.5, %v284_v46 }
  0xc1   : > { %v286_v49 = vmul.f32 %v629_v43, %v285_v47 }
  0xc3   : > { %v290_v50 = vsel %vm289_vm4, %v629_v43, %v286_v49  ;;  %v622_v43 = vld [vmem:[#allocation2 + $0x214] ss:$0 sm:$0xff] }
  0xc4   : > { %v291_v51 = vmul.f32 %v290_v50, %v223_v48 }
  0xc6   : > { %v292_v52 = vperm.slane %v291_v51, 0 }
  0xc8   : > { %v293_v54 = vmul.f32 %v292_v52, %v271_v26  ;;  %v190_v52 = vld [vmem:[#allocation2 + $0x108] sm:$0xff] }
  0xc9   : > { %404 = vmatpush.msra.mxu3 %v190_v52  ;;  %v217_v52 = vld [vmem:[#allocation2 + $0x1e0] sm:$0xff] }
  0xca   : > { %v295_v55 = vadd.f32 %v620_v53, %v293_v54 }
  0xcc   : > { %v296_v56 = vmax.f32 %v295_v55, 0.0  ;;  %v206_v55 = vld [vmem:[#allocation2 + $0x188] sm:$0xff] }
  0xcd   : > { %442 = vmatpush.msrb.mxu0 %v206_v55 }
  0xce   : > { %313 = vmatmul.f32.vlgmr.msra.gmra.mxu1 %v296_v56 }
 0x14b   : > { %v314_v58 = vpop.f32.mrf.mxu1 }
 0x14c   : > { %v317_v59 = vrot.slane %v314_v58, 4 }
 0x14e   : > { %v318_v61 = vadd.f32 %v317_v59, %v314_v58 }
 0x150   : > { %v319_v63 = vrot.slane %v318_v61, 2 }
 0x152   : > { %v320_v2 = vadd.f32 %v319_v63, %v318_v61  ;;  %v203_v61 = vld [vmem:[#allocation2 + $0x170] sm:$0xff]  ;;  %v202_v63 = vld [vmem:[#allocation2 + $0x168] sm:$0xff] }
 0x154   : > { %v321_v4 = vrot.slane %v320_v2, 1 }
 0x156   : > { %v322_v6 = vadd.f32 %v321_v4, %v320_v2  ;;  %v201_v2 = vld [vmem:[#allocation2 + $0x160] sm:$0xff]  ;;  %v200_v4 = vld [vmem:[#allocation2 + $0x158] sm:$0xff] }
 0x158   : > { %v323_v8 = vmul.f32 %v322_v6, %v724_v21  ;;  %v199_v6 = vld [vmem:[#allocation2 + $0x150] sm:$0xff] }
 0x15a   : > { %v324_v10 = vsub.f32 %v314_v58, %v323_v8  ;;  %v205_v58 = vld [vmem:[#allocation2 + $0x180] sm:$0xff]  ;;  %v198_v8 = vld [vmem:[#allocation2 + $0x148] sm:$0xff] }
 0x15b   : > { %443 = vmatpush.msrb.mxu0 %v205_v58  ;;  %v214_v58 = vld [vmem:[#allocation2 + $0x1c8] sm:$0xff] }
 0x15c   : > { %v325_v12 = vmul.f32 %v324_v10, %v324_v10 }
 0x15d   : > { %444 = vmatpush.msrb.mxu0 %v204_v60  ;;  %v213_v60 = vld [vmem:[#allocation2 + $0x1c0] sm:$0xff] }
 0x15e   : > { %v326_v14 = vrot.slane %v325_v12, 4 }
 0x15f   : > { %445 = vmatpush.msrb.mxu0 %v203_v61  ;;  %v212_v61 = vld [vmem:[#allocation2 + $0x1b8] sm:$0xff] }
 0x160   : > { %v327_v16 = vadd.f32 %v326_v14, %v325_v12  ;;  %v196_v12 = vld [vmem:[#allocation2 + $0x138] sm:$0xff]  ;;  %v195_v14 = vld [vmem:[#allocation2 + $0x130] sm:$0xff] }
 0x161   : > { %446 = vmatpush.msrb.mxu0 %v202_v63  ;;  %v211_v63 = vld [vmem:[#allocation2 + $0x1b0] sm:$0xff] }
 0x162   : > { %v328_v18 = vrot.slane %v327_v16, 2 }
 0x163   : > { %447 = vmatpush.msrb.mxu0 %v201_v2  ;;  %v210_v2 = vld [vmem:[#allocation2 + $0x1a8] sm:$0xff] }
 0x164   : > { %v329_v20 = vadd.f32 %v328_v18, %v327_v16  ;;  %v194_v16 = vld [vmem:[#allocation2 + $0x128] sm:$0xff]  ;;  %v193_v18 = vld [vmem:[#allocation2 + $0x120] sm:$0xff] }
 0x165   : > { %448 = vmatpush.msrb.mxu0 %v200_v4  ;;  %v209_v4 = vld [vmem:[#allocation2 + $0x1a0] sm:$0xff] }
 0x166   : > { %v330_v24 = vrot.slane %v329_v20, 1 }
 0x167   : > { %449 = vmatpush.msrb.mxu0 %v199_v6 }
 0x168   : > { %v331_v26 = vadd.f32 %v330_v24, %v329_v20 }
 0x169   : > { %450 = vmatpush.msrb.mxu0 %v198_v8 }
 0x16a   : > { %v332_v27 = vmul.f32 %v331_v26, %v724_v21 }
 0x16c   : > { %v333_v28 = vadd.f32 1e-05, %v332_v27 }
 0x16e   : > { %630 = vrsqrt.f32 %v333_v28  ;;  %vm340_vm6 = vweird.f32 %v333_v28 }
 0x174   : > { %v631_v29 = vpop.eup %630 }
 0x175   : > { %v335_v30 = vmul.f32 %v631_v29, %v333_v28  ;;  %vm341_vm5 = vweird.f32 %v631_v29 }
 0x176   : > { %vm342_vm7 = vmor %vm340_vm6, %vm341_vm5 }
 0x177   : > { %v336_v31 = vmul.f32 %v631_v29, %v335_v30 }
 0x179   : > { %v337_v32 = vmul.f32 0.5, %v336_v31  ;;  %v228_v31 = vld [vmem:[#allocation2 + $0x215] sm:$0x1] }
 0x17b   : > { %v338_v33 = vsub.f32 1.5, %v337_v32 }
 0x17d   : > { %v339_v35 = vmul.f32 %v631_v29, %v338_v33 }
 0x17f   : > { %v343_v36 = vsel %vm342_vm7, %v631_v29, %v339_v35 }
 0x180   : > { %v344_v37 = vmul.f32 %v343_v36, %v225_v34  ;;  %v623_v36 = vld [vmem:[#allocation2 + $0x216] ss:$0 sm:$0xff] }
 0x182   : > { %v345_v38 = vperm.slane %v344_v37, 0 }
 0x184   : > { %v346_v40 = vmul.f32 %v345_v38, %v324_v10  ;;  %v197_v10 = vld [vmem:[#allocation2 + $0x140] sm:$0xff] }
 0x185   : > { %451 = vmatpush.msrb.mxu0 %v197_v10 }
 0x186   : > { %v348_v41 = vadd.f32 %v621_v39, %v346_v40  ;;  %v222_v40 = vld [vmem:[#allocation2 + $0x208] sm:$0xff] }
 0x187   : > { %452 = vmatpush.msrb.mxu0 %v196_v12  ;;  %496 = vmatpush.msrb.mxu3 %v222_v40 }
 0x188   : > { %v349_v42 = vmax.f32 %v348_v41, 0.0 }
 0x189   : > { %453 = vmatpush.msrb.mxu0 %v195_v14 }
 0x18a   : > { %367 = vmatmul.f32.vlgmr.msra.gmra.mxu2 %v349_v42 }
 0x18b   : > { %454 = vmatpush.msrb.mxu0 %v194_v16  ;;  %v230_v16 = vld [vmem:[#allocation2 + $0x217] sm:$0x1] }
 0x18d   : > { %455 = vmatpush.msrb.mxu0 %v193_v18 }
 0x18f   : > { %456 = vmatpush.msrb.mxu0 %v192_v19 }
 0x191   : > { %457 = vmatpush.msrb.mxu0 %v191_v22  ;;  %v624_v22 = vld [vmem:[#allocation2 + $0x218] ss:$0 sm:$0xff] }
 0x20d   : > { %v368_v44 = vpop.f32.mrf.mxu2 }
 0x20e   : > { %v730_v45 = vadd.f32 %v622_v43, %v368_v44  ;;  %v221_v43 = vld [vmem:[#allocation2 + $0x200] sm:$0xff] }
 0x20f   : > { %497 = vmatpush.msrb.mxu3 %v221_v43 }
 0x210   : > { %v371_v46 = vmul.f32 0.5, %v730_v45 }
 0x212   : > { %v372_v47 = vmul.f32 1.442695, %v371_v46  ;;  %v220_v46 = vld [vmem:[#allocation2 + $0x1f8] sm:$0xff] }
 0x213   : > { %498 = vmatpush.msrb.mxu3 %v220_v46 }
 0x214   : > { %632 = vpow2.f32 %v372_v47 }
 0x21a   : > { %v633_v48 = vpop.eup %632 }
 0x21b   : > { %375 = vrot.lane.b32.xlu0 %v633_v48, %s684_s22  ;;  %v219_v48 = vld [vmem:[#allocation2 + $0x1f0] sm:$0xff] }
 0x21c   : > { %499 = vmatpush.msrb.mxu3 %v219_v48 }
 0x28d   : > { %v376_v49 = vpop.permute.xlu0 %375 }
 0x28e   : > { %v378_v50 = vmul.f32 %v376_v49, %v720_v1 }
 0x290   : > { %v379_v51 = vadd.f32 %v378_v50, %v730_v45  ;;  %v218_v50 = vld [vmem:[#allocation2 + $0x1e8] sm:$0xff] }
 0x291   : > { %500 = vmatpush.msrb.mxu3 %v218_v50 }
 0x292   : > { %381 = vrot.lane.b32.xlu0 %v379_v51, %s685_s23 }
 0x293   : > { %501 = vmatpush.msrb.mxu3 %v217_v52 }
 0x304   : > { %v382_v53 = vpop.permute.xlu0 %381 }
 0x305   : > { %v385_v54 = vsel %vm384_vm8, %v382_v53, 0.0 }
 0x306   : > { %593 = vmatmul.msk.f32.vlgmr.msra.gmra.mxu3 %vm233_vm0, %v385_v54  ;;  %v216_v54 = vld [vmem:[#allocation2 + $0x1d8] sm:$0xff] }
 0x307   : > { %502 = vmatpush.msrb.mxu3 %v216_v54 }
 0x389   : > { %v406_v56 = vpop.f32.mrf.mxu3 }
 0x38a   : > { %v409_v57 = vrot.slane %v406_v56, 4 }
 0x38c   : > { %v410_v59 = vadd.f32 %v409_v57, %v406_v56 }
 0x38e   : > { %v411_v1 = vrot.slane %v410_v59, 2 }
 0x390   : > { %v412_v62 = vadd.f32 %v411_v1, %v410_v59 }
 0x392   : > { %v413_v0 = vrot.slane %v412_v62, 1 }
 0x394   : > { %v414_v3 = vadd.f32 %v413_v0, %v412_v62 }
 0x396   : > { %v415_v5 = vmul.f32 %v414_v3, %v724_v21 }
 0x398   : > { %v416_v7 = vsub.f32 %v406_v56, %v415_v5  ;;  %v215_v56 = vld [vmem:[#allocation2 + $0x1d0] sm:$0xff]  ;;  %v208_v5 = vld [vmem:[#allocation2 + $0x198] sm:$0xff] }
 0x399   : > { %503 = vmatpush.msrb.mxu3 %v215_v56 }
 0x39a   : > { %v417_v9 = vmul.f32 %v416_v7, %v416_v7 }
 0x39b   : > { %504 = vmatpush.msrb.mxu3 %v214_v58 }
 0x39c   : > { %v418_v11 = vrot.slane %v417_v9, 4 }
 0x39d   : > { %505 = vmatpush.msrb.mxu3 %v213_v60 }
 0x39e   : > { %v419_v13 = vadd.f32 %v418_v11, %v417_v9 }
 0x39f   : > { %506 = vmatpush.msrb.mxu3 %v212_v61 }
 0x3a0   : > { %v420_v15 = vrot.slane %v419_v13, 2 }
 0x3a1   : > { %507 = vmatpush.msrb.mxu3 %v211_v63 }
 0x3a2   : > { %v421_v17 = vadd.f32 %v420_v15, %v419_v13 }
 0x3a3   : > { %508 = vmatpush.msrb.mxu3 %v210_v2 }
 0x3a4   : > { %v422_v20 = vrot.slane %v421_v17, 1 }
 0x3a5   : > { %509 = vmatpush.msrb.mxu3 %v209_v4 }
 0x3a6   : > { %v423_v23 = vadd.f32 %v422_v20, %v421_v17 }
 0x3a7   : > { %510 = vmatpush.msrb.mxu3 %v208_v5 }
 0x3a8   : > { %v424_v24 = vmul.f32 %v423_v23, %v724_v21 }
 0x3aa   : > { %v425_v25 = vadd.f32 1e-05, %v424_v24 }
 0x3ac   : > { %634 = vrsqrt.f32 %v425_v25  ;;  %vm432_vm10 = vweird.f32 %v425_v25 }
 0x3b2   : > { %v635_v26 = vpop.eup %634 }
 0x3b3   : > { %v427_v27 = vmul.f32 %v635_v26, %v425_v25  ;;  %vm433_vm9 = vweird.f32 %v635_v26  ;;  %v625_v25 = vld [vmem:[#allocation2 + $0x219] ss:$0 sm:$0xff] }
 0x3b4   : > { %vm434_vm11 = vmor %vm432_vm10, %vm433_vm9 }
 0x3b5   : > { %v428_v28 = vmul.f32 %v635_v26, %v427_v27 }
 0x3b7   : > { %v429_v29 = vmul.f32 0.5, %v428_v28 }
 0x3b9   : > { %v430_v30 = vsub.f32 1.5, %v429_v29 }
 0x3bb   : > { %v431_v32 = vmul.f32 %v635_v26, %v430_v30 }
 0x3bd   : > { %v435_v33 = vsel %vm434_vm11, %v635_v26, %v431_v32 }
 0x3be   : > { %v436_v34 = vmul.f32 %v435_v33, %v228_v31 }
 0x3c0   : > { %v437_v35 = vperm.slane %v436_v34, 0 }
 0x3c2   : > { %v438_v37 = vmul.f32 %v437_v35, %v416_v7  ;;  %v207_v7 = vld [vmem:[#allocation2 + $0x190] sm:$0xff] }
 0x3c3   : > { %511 = vmatpush.msrb.mxu3 %v207_v7 }
 0x3c4   : > { %v440_v38 = vadd.f32 %v623_v36, %v438_v37 }
 0x3c6   : > { %v441_v39 = vmax.f32 %v440_v38, 0.0 }
 0x3c8   : > { %458 = vmatmul.f32.vlgmr.msrb.gmra.mxu0 %v441_v39 }
 0x445   : > { %v459_v41 = vpop.f32.mrf.mxu0 }
 0x446   : > { %v462_v42 = vrot.slane %v459_v41, 4 }
 0x448   : > { %v463_v44 = vadd.f32 %v462_v42, %v459_v41 }
 0x44a   : > { %v464_v47 = vrot.slane %v463_v44, 2 }
 0x44c   : > { %v465_v49 = vadd.f32 %v464_v47, %v463_v44 }
 0x44e   : > { %v466_v51 = vrot.slane %v465_v49, 1 }
 0x450   : > { %v467_v53 = vadd.f32 %v466_v51, %v465_v49 }
 0x452   : > { %v468_v55 = vmul.f32 %v467_v53, %v724_v21 }
 0x454   : > { %v469_v57 = vsub.f32 %v459_v41, %v468_v55 }
 0x456   : > { %v470_v59 = vmul.f32 %v469_v57, %v469_v57 }
 0x458   : > { %v471_v1 = vrot.slane %v470_v59, 4 }
 0x45a   : > { %v472_v62 = vadd.f32 %v471_v1, %v470_v59 }
 0x45c   : > { %v473_v0 = vrot.slane %v472_v62, 2 }
 0x45e   : > { %v474_v3 = vadd.f32 %v473_v0, %v472_v62 }
 0x460   : > { %v475_v6 = vrot.slane %v474_v3, 1 }
 0x462   : > { %v476_v8 = vadd.f32 %v475_v6, %v474_v3 }
 0x464   : > { %v477_v9 = vmul.f32 %v476_v8, %v724_v21 }
 0x466   : > { %v478_v10 = vadd.f32 1e-05, %v477_v9 }
 0x468   : > { %636 = vrsqrt.f32 %v478_v10  ;;  %vm485_vm13 = vweird.f32 %v478_v10 }
 0x46e   : > { %v637_v11 = vpop.eup %636 }
 0x46f   : > { %v480_v12 = vmul.f32 %v637_v11, %v478_v10  ;;  %vm486_vm12 = vweird.f32 %v637_v11 }
 0x470   : > { %vm487_vm14 = vmor %vm485_vm13, %vm486_vm12 }
 0x471   : > { %v481_v13 = vmul.f32 %v637_v11, %v480_v12 }
 0x473   : > { %v482_v14 = vmul.f32 0.5, %v481_v13 }
 0x475   : > { %v483_v15 = vsub.f32 1.5, %v482_v14 }
 0x477   : > { %v484_v17 = vmul.f32 %v637_v11, %v483_v15 }
 0x479   : > { %v488_v18 = vsel %vm487_vm14, %v637_v11, %v484_v17 }
 0x47a   : > { %v489_v19 = vmul.f32 %v488_v18, %v230_v16 }
 0x47c   : > { %v490_v20 = vperm.slane %v489_v19, 0 }
 0x47e   : > { %v491_v23 = vmul.f32 %v490_v20, %v469_v57 }
 0x480   : > { %v493_v24 = vadd.f32 %v624_v22, %v491_v23 }
 0x482   : > { %v494_v21 = vmax.f32 %v493_v24, 0.0 }
 0x484   : > { %512 = vmatmul.f32.vlgmr.msrb.gmra.mxu3 %v494_v21 }
 0x507   : > { %v513_v26 = vpop.f32.mrf.mxu3 }
 0x508   : > { %v514_v27 = vadd.f32 %v625_v25, %v513_v26 }
 0x50a   : > { %v516_v28 = vadd.f32 %v514_v27, %v730_v45 }
 0x50c   : > { %517 = vst [vmem:[%s155_s26] sm:$0xff] %v516_v28 }
 0x50d PF: > { %s13_s9 = sadd.s32 1, %s678_s9  }
 0x50e   : > { %p10_p7 = scmp.ge.s32.totalorder %s13_s9, 6  }
 0x510   :  { %12 = sbr.rel (!%p10_p7) target bundleno = 1 (0x1), region = 63 }
 0x515   :  { %537 = vsyncpa [#allocation3], 1 }
 0x516   :  { %539 = vsyncpa [#allocation3 + $0x1], 1 }

</bundles_post_ra>
